<compile_context>
chip_gen: v6e
topology: v6e:2x2x1
jax: 0.10.0
libtpu: 0.0.40
codegen_flags: <defaults>
</compile_context>

<pallas_src>
import functools

import jax
import jax.numpy as jnp
from jax.experimental import pallas as pl
from jax.experimental.pallas import tpu as pltpu

LANE = 128                       # vreg lane width
_MIN_GRID_STEPS = 8              # keep both v7x TensorCores busy


# ---------------------------------------------------------------------------
# kernel
# ---------------------------------------------------------------------------
def _layernorm_kernel(x_ref, g_ref, o_ref, *, eps):
    # x_ref: (1, C, TS) block; normalize over the channel axis (axis=1).
    # Columns belonging to a ragged edge block are garbage but their stores
    # are masked by Pallas, and every lane column is independent.
    x = x_ref[...].astype(jnp.float32)                           # compute in f32
    mean = jnp.mean(x, axis=1, keepdims=True)                    # (1, 1, TS) sublane reduce
    centered = x - mean
    var = jnp.mean(centered * centered, axis=1, keepdims=True)   # unbiased=False
    inv = jax.lax.rsqrt(var + eps)                               # EUP rsqrt (free slot)
    o_ref[...] = (centered * inv * g_ref[...]).astype(o_ref.dtype)


# ---------------------------------------------------------------------------
# VMEM budgeting / tiling helpers
# ---------------------------------------------------------------------------
def _vmem_capacity_bytes():
    try:
        return int(pltpu.get_tpu_info().vmem_capacity_bytes)
    except Exception:
        return 64 * 1024 * 1024   # conservative (v7x per-TensorCore physical)


def _padded_channels(C, itemsize):
    # Sublane packing: 8 rows/vreg for 4-byte, 16 for 2-byte, 32 for 1-byte.
    pack = 8 * max(1, 4 // itemsize)
    return pl.cdiv(C, pack) * pack


def _choose_spatial_tile(S, N, C, itemsize, budget_bytes):
    """Multiple-of-128 spatial tile sized from the real VMEM footprint."""
    if S <= LANE:
        return S                                   # full extent (always legal)
    padded_c = _padded_channels(C, itemsize)
    # Per spatial column: in + out double-buffered in x dtype + ~3 f32 temps.
    bytes_per_col = padded_c * (4 * itemsize + 3 * 4)
    ts = max(LANE, (budget_bytes // bytes_per_col) // LANE * LANE)
    ts = min(ts, (S // LANE) * LANE)               # never exceed the array extent
    # Keep enough parallel grid steps for megacore (v7x has 2 TCs).
    while ts > LANE and N * pl.cdiv(S, ts) < _MIN_GRID_STEPS:
        ts = max(LANE, (ts // 2) // LANE * LANE)
    return ts


# ---------------------------------------------------------------------------
# wrapper
# ---------------------------------------------------------------------------
def layer_norm(x, g, *, eps=None):
    """Pallas equivalent of LayerNorm(dim)(x) for x of shape (N, C, *spatial)."""
    if eps is None:
        eps = 1e-5 if x.dtype == jnp.float32 else 1e-3

    N, C = x.shape[0], x.shape[1]
    S = 1
    for d in x.shape[2:]:
        S *= d

    x3 = x.reshape(N, C, S)                                  # lane-dense view
    g3 = jnp.asarray(g, jnp.float32).reshape(1, C, 1)        # keep scale in f32

    itemsize = x3.dtype.itemsize
    vmem_cap = _vmem_capacity_bytes()
    budget = min(int(vmem_cap * 0.35), 32 * 1024 * 1024)     # working-set target

    TS = _choose_spatial_tile(S, N, C, itemsize, budget)
    grid = (N, pl.cdiv(S, TS))                               # ragged edge is masked

    # Explicit scoped-VMEM limit: 2x double-buffered in + out blocks plus a
    # generous f32-temporary allowance and fixed headroom, clamped to physical.
    padded_c = _padded_channels(C, itemsize)
    block_bytes = padded_c * TS * itemsize
    need = 4 * block_bytes + 4 * padded_c * TS * 4 + (2 << 20)
    vmem_limit = min(int(vmem_cap * 0.9), max(need, 32 << 20))

    x_spec = pl.BlockSpec((1, C, TS), lambda n, s: (n, 0, s))
    g_spec = pl.BlockSpec((1, C, 1), lambda n, s: (0, 0, 0))
    # NOTE: if a trace shows exposed DMA between short steps, x_spec can take
    # pipeline_mode=pl.Buffered(3); skipped here to preserve VMEM headroom.

    out3 = pl.pallas_call(
        functools.partial(_layernorm_kernel, eps=float(eps)),
        out_shape=jax.ShapeDtypeStruct(x3.shape, x.dtype),
        grid_spec=pltpu.PrefetchScalarGridSpec(
            num_scalar_prefetch=0,
            grid=grid,
            in_specs=[x_spec, g_spec],
            out_specs=x_spec,
        ),
        compiler_params=pltpu.CompilerParams(
            dimension_semantics=("parallel", "parallel"),
            vmem_limit_bytes=int(vmem_limit),
        ),
    )(x3, g3)

    return out3.reshape(x.shape)


# ---------------------------------------------------------------------------
# demo / correctness check
# ---------------------------------------------------------------------------
if __name__ == "__main__":
    key = jax.random.PRNGKey(0)
    N, C, D, H, W = 2, 4, 8, 16, 16                    # NCDHW, per the 5-D g param
    x = jax.random.normal(key, (N, C, D, H, W), dtype=jnp.float32)
    # deterministic, non-trivial per-channel scale (nn.Parameter g)
    g = (1.0 + 0.1 * jnp.arange(C, dtype=jnp.float32)).reshape(1, C, 1, 1, 1)

    out = layer_norm(x, g)
    out = jax.block_until_ready(out)

    eps = 1e-5
    mean = jnp.mean(x, axis=1, keepdims=True)
    var = jnp.mean((x - mean) ** 2, axis=1, keepdims=True)   # unbiased=False
    ref = (x - mean) * jax.lax.rsqrt(var + eps) * g

    assert out.shape == x.shape and out.dtype == x.dtype
    assert jnp.allclose(out, ref, atol=1e-5, rtol=1e-5)
    print("KERNEL_OK")
</pallas_src>

<mosaic_0001>
module attributes {stable_mosaic.version = 11 : i64} {
  func.func @_layernorm_kernel(%arg0: i32, %arg1: i32, %arg2: memref<1x4x512xf32, #tpu.memory_space<vmem>>, %arg3: memref<1x4x1xf32, #tpu.memory_space<vmem>>, %arg4: memref<1x4x512xf32, #tpu.memory_space<vmem>>) attributes {dimension_semantics = [#tpu.dimension_semantics<parallel>, #tpu.dimension_semantics<parallel>], iteration_bounds = array<i64: 2, 4>, scalar_prefetch = 0 : i64, scratch_operands = 0 : i64, tpu.core_type = #tpu.core_type<tc>, window_params = [{transform_indices = @transform_0, window_bounds = array<i64: 1, 4, 512>}, {pipeline_mode = #tpu.pipeline_mode<synchronous>, transform_indices = @transform_1, window_bounds = array<i64: 1, 4, 1>}, {transform_indices = @transform_2, window_bounds = array<i64: 1, 4, 512>}]} {
    %c0 = arith.constant 0 : index
    %c0_0 = arith.constant 0 : index
    %c0_1 = arith.constant 0 : index
    %0 = vector.load %arg2[%c0, %c0_0, %c0_1] : memref<1x4x512xf32, #tpu.memory_space<vmem>>, vector<1x4x512xf32>
    %cst = arith.constant dense<0.000000e+00> : vector<1x512xf32>
    %1 = vector.multi_reduction <add>, %0, %cst [1] : vector<1x4x512xf32> to vector<1x512xf32>
    %2 = vector.shape_cast %1 : vector<1x512xf32> to vector<1x1x512xf32>
    %cst_2 = arith.constant 4.000000e+00 : f32
    %3 = vector.broadcast %cst_2 : f32 to vector<1x1x512xf32>
    %4 = arith.divf %2, %3 : vector<1x1x512xf32>
    %5 = vector.broadcast %4 : vector<1x1x512xf32> to vector<1x4x512xf32>
    %6 = arith.subf %0, %5 : vector<1x4x512xf32>
    %7 = arith.mulf %6, %6 : vector<1x4x512xf32>
    %cst_3 = arith.constant dense<0.000000e+00> : vector<1x512xf32>
    %8 = vector.multi_reduction <add>, %7, %cst_3 [1] : vector<1x4x512xf32> to vector<1x512xf32>
    %9 = vector.shape_cast %8 : vector<1x512xf32> to vector<1x1x512xf32>
    %cst_4 = arith.constant 4.000000e+00 : f32
    %10 = vector.broadcast %cst_4 : f32 to vector<1x1x512xf32>
    %11 = arith.divf %9, %10 : vector<1x1x512xf32>
    %cst_5 = arith.constant 9.99999974E-6 : f32
    %12 = vector.broadcast %cst_5 : f32 to vector<1x1x512xf32>
    %13 = arith.addf %11, %12 : vector<1x1x512xf32>
    %14 = math.rsqrt %13 : vector<1x1x512xf32>
    %15 = vector.broadcast %14 : vector<1x1x512xf32> to vector<1x4x512xf32>
    %16 = arith.mulf %6, %15 : vector<1x4x512xf32>
    %c0_6 = arith.constant 0 : index
    %c0_7 = arith.constant 0 : index
    %c0_8 = arith.constant 0 : index
    %17 = vector.load %arg3[%c0_6, %c0_7, %c0_8] : memref<1x4x1xf32, #tpu.memory_space<vmem>>, vector<1x4x1xf32>
    %18 = vector.broadcast %17 : vector<1x4x1xf32> to vector<1x4x512xf32>
    %19 = arith.mulf %16, %18 : vector<1x4x512xf32>
    %c0_9 = arith.constant 0 : index
    %c0_10 = arith.constant 0 : index
    %c0_11 = arith.constant 0 : index
    %20 = vector.load %arg4[%c0_9, %c0_10, %c0_11] : memref<1x4x512xf32, #tpu.memory_space<vmem>>, vector<1x4x512xf32>
    tpu.vector_store %arg4[%c0_9, %c0_10, %c0_11], %19 {strides = array<i32>} : memref<1x4x512xf32, #tpu.memory_space<vmem>>, vector<1x4x512xf32>,
    return
  }
  func.func @transform_0(%arg0: i32, %arg1: i32) -> (i32, i32, i32) {
    %c0_i32 = arith.constant 0 : i32
    %c0_i32_0 = arith.constant 0 : i32
    return %arg0, %c0_i32, %arg1 : i32, i32, i32
  }
  func.func @transform_1(%arg0: i32, %arg1: i32) -> (i32, i32, i32) {
    %c0_i32 = arith.constant 0 : i32
    %c0_i32_0 = arith.constant 0 : i32
    %c0_i32_1 = arith.constant 0 : i32
    %c0_i32_2 = arith.constant 0 : i32
    return %c0_i32, %c0_i32_0, %c0_i32_1 : i32, i32, i32
  }
  func.func @transform_2(%arg0: i32, %arg1: i32) -> (i32, i32, i32) {
    %c0_i32 = arith.constant 0 : i32
    %c0_i32_0 = arith.constant 0 : i32
    return %arg0, %c0_i32, %arg1 : i32, i32, i32
  }
}

</mosaic_0001>

<bundles_post_ra>
// kernel: tpu_custom_call.1
= control target key start
LH: loop header
LB: loop body
LE: loop exit
PB: predicated region body
PF: predicated region fallthrough
CT: control target
= control target key end

     0   :  { %7 = vsyncpa [#allocation3], 0  ;;  %s841_s0 = inlined_call_operand.hbm [shape: f32[2,4,2048], index: 0, kind: input, shape index: {}]   ;;  %s842_s1 = inlined_call_operand.vmem [shape: f32[1,4,1], index: 1, kind: input, shape index: {}]   ;;  %s843_s2 = inlined_call_operand.hbm [shape: f32[2,4,2048], index: 2, kind: output, shape index: {}]  }
   0x1   :  { %9 = vsyncpa [#allocation3 + $0x1], 0 }
   0x2   :  { %10 = vsyncpa [#allocation4], 0 }
   0x3   :  { %12 = vsyncpa [#allocation4 + $0x1], 0  ;;  %s664_s9 = smov 0   ;;  %s666_s10 = smov 0  }
   0x4   :  { %s668_s11 = smov 0   ;;  %s670_s12 = smov 0  }
   0x5   :  { %s672_s13 = smov 0   ;;  %s674_s14 = smov 0  }
   0x6   :  { %s676_s15 = smov 0   ;;  %s678_s16 = smov 0  }
   0x7 LB: > { %s411_s17 = sadd.s32 4294967295, %s643_s16   ;;  %s412_s18 = sadd.s32 4294967294, %s643_s16   ;;  %s643_s16 = sphi %s678_s16, %s18_s16   ;;  %s639_s15 = sphi %s676_s15, %s856_s15   ;;  %s635_s14 = sphi %s674_s14, %s855_s14   ;;  %s631_s13 = sphi %s672_s13, %s854_s13   ;;  %s627_s12 = sphi %s670_s12, %s853_s12   ;;  %s623_s11 = sphi %s668_s11, %s852_s11   ;;  %s619_s10 = sphi %s666_s10, %s851_s10   ;;  %s615_s9 = sphi %s664_s9, %s850_s9  }
   0x8   : > { %s27_s19 = sadd.s32 1, %s635_s14  ;;  %s30_s20 = sadd.s32 1, %s639_s15 }
   0x9   : > { %p28_p0 = scmp.ge.s32.totalorder %s27_s19, 4  ;;  %s39_s21 = sadd.s32 1, %s623_s11 }
   0xa   : > { %p46_p1 = scmp.ne.s32.totalorder %s623_s11, %s619_s10  ;;  %p47_p2 = scmp.eq.s32.totalorder %s643_s16, 0 }
   0xb   : > { %s858_s19 = smov (%p28_p0, %s27_s19), 0  ;;  %s860_s20 = smov (!%p28_p0, %s30_s20), %s639_s15 }
   0xc   : > { %s35_s22 = ssub.s32 %s635_s14, %s858_s19  ;;  %p717_p3 = por %p47_p2, %p46_p1 }
   0xd   : > { %p32_p4 = scmp.ge.s32.totalorder %s860_s20, 2  ;;  %p52_p5 = scmp.ne.s32.totalorder %s619_s10, %s615_s9 }
   0xe   : > { %p53_p6 = scmp.eq.s32.totalorder %s411_s17, 0  ;;  %p99_p7 = scmp.eq.s32.totalorder %s411_s17, 7 }
   0xf   : > { %s862_s20 = smov (%p32_p4, %s860_s20), 0  ;;  %p105_p10 = scmp.eq.s32.totalorder %s412_s18, 7 }
  0x10   : > { %p725_p8 = por %p53_p6, %p52_p5  ;;  %p729_p9 = por %p99_p7, %p46_p1 }
  0x11   : > { %s34_s26 = ssub.s32 %s639_s15, %s862_s20  ;;  %p735_p12 = por %p105_p10, %p52_p5 }
  0x12   : > { %s36_s27 = sor.u32 %s35_s22, %s34_s26  ;;  %p440_p13 = scmp.lt.s32.totalorder %s643_s16, 8 }
  0x13   : > { %p37_p11 = scmp.eq.s32.totalorder %s36_s27, 0  ;;  %s128_s29 = sand.u32 1, %s623_s11  }
  0x14   : > { %s847_s28 = scalar_select %p735_p12, 1, 0 }
  0x15   : > { %s742_s30 = scalar_select %p37_p11, %s623_s11, %s39_s21  }
  0x16   : > { %s415_s3 = sshll.u32 %s128_s29, 4  ;;  %s416_s4 = sshll.u32 %s635_s14, 2 }
  0x17   : > { %s417_s5 = sshll.u32 %s639_s15, 4  ;;  %s132_s6 = scalar_lea.vmem [#allocation2], %s415_s3 }
  0x18   : > { %s142_s7 = sshll.u32 %s132_s6, 4  ;;  %s138_s8 = sadd.s32 %s417_s5, %s416_s4  ;;  %s143_s7 = int_to_ptr.vmem [resolvable:$true] %s142_s7 }
  0x19   : > { %s418_s17 = sshll.u32 %s138_s8, 6  ;;  %p748_p0 = pnand %p440_p13, %p717_p3 }
  0x1a   : > { %s140_s27 = scalar_lea.hbm %s841_s0, %s418_s17  ;;  %p419_p1 = scmp.ge.s32.totalorder %s643_s16, 1 }
  0x1b   : > { %p147_p2 = scmp.lt.s32.totalorder %s643_s16, 9  ;;  %s129_s21 = scalar_lea.sflag [#allocation3], %s128_s29 }
  0x1c   : > { %p521_p4 = pneg %p748_p0  ;;  %s532_s3 = scalar_lea.vmem %s143_s7, 256 }
  0x1d   : > { %p533_p5 = scmp.ne.s32.totalorder %s143_s7, %s532_s3  ;;  %s645_s4 = smov [#allocation2]  }
  0x1e   : > { %s537_s23 = sshll.u32 %s645_s4, 4  ;;  %s538_s23 = int_to_ptr.vmem [resolvable:$false] %s537_s23 }
  0x1f   : > { %p535_p6 = pnand %p533_p5, %p521_p4  ;;  %s539_s5 = scalar_lea.vmem %s538_s23, 512 }
  0x20   : > { %p540_p3 = scmp.lt.s32.totalorder %s143_s7, %s538_s23  ;;  %p541_p10 = scmp.lt.s32.totalorder %s539_s5, %s532_s3 }
  0x21   : > { %p536_p7 = pneg %p535_p6 }
  0x22   : > { %p542_p11 = por %p541_p10, %p540_p3 }
  0x24   : > { %p543_p13 = pnand %p542_p11, %p536_p7 }
  0x26   : > { %546 = shalt.err (!%p543_p13)
}
  0x27   : > { %435 = dma.hbm_to_vmem [thread:$0]  (!%p748_p0), %s140_s27, 256, %s143_s7, %s129_s21  }
  0x28   : > { %p148_p12 = pnand %p419_p1, %p147_p2 }
  0x29   : > { %s766_s29 = sand.u32 (!%p148_p12), 1, %s619_s10  }
  0x2a   : > { %151 = sbr.rel (%p148_p12) target bundleno = 191 (0xbf), region = 28  ;;  %s420_s6 = sshll.u32 (!%p148_p12), %s766_s29, 4 }
  0x2b   : > { %s154_s8 = scalar_lea.sflag (!%p148_p12), [#allocation3], %s766_s29  ;;  %s157_s17 = scalar_lea.vmem (!%p148_p12), [#allocation2], %s420_s6 }
  0x2f   : > { %606 = dma.done.wait (%p725_p8), %s154_s8, 256  }
  0x30   : > { %608 = vsyncadd (%p725_p8), %s154_s8, 4294967040  ;;  %v646_v0 = vmov 0   ;;  %v290_v1 = vld [vmem:[%s842_s1] sm:$0xf]  ;;  %v181_v3 = vld [vmem:[%s157_s17 + $0x8] sm:$0xff]  ;;  %vm188_vm0 = vcmask 1043456  }
  0x31   : > { %508 = vset.pattern.permute.xlu0 %v646_v0  ;;  %v180_v2 = vld [vmem:[%s157_s17] sm:$0xff]  ;;  %v185_v5 = vcombine.high %v181_v3, %v181_v3  ;;  %v203_v8 = vsel %vm188_vm0, %v181_v3, 0.0  ;;  %s423_s24 = sshll.u32 %s627_s12, 2  ;;  %s424_s22 = sshll.u32 %s631_s13, 4 }
  0x32   : > { %293 = vperm.xlu0 %508, %v290_v1   ;;  %v184_v4 = vcombine.high %v180_v2, %v180_v2  ;;  %v189_v6 = vsel %vm188_vm0, %v180_v2, 0.0  ;;  %v204_v12 = vrot.slane %v203_v8, 4  ;;  %s320_s26 = sadd.s32 %s424_s22, %s423_s24  ;;  %s177_s21 = scalar_lea.vmem [#allocation5], %s420_s6 }
  0x33   : > { %v210_v9 = vsel %vm188_vm0, %v185_v5, 0.0  ;;  %v190_v10 = vrot.slane %v189_v6, 4  ;;  %s425_s27 = sshll.u32 %s320_s26, 6  ;;  %s324_s3 = sshll.u32 %s177_s21, 4  ;;  %s325_s3 = int_to_ptr.vmem [resolvable:$true] %s324_s3 }
  0x34   : > { %v196_v7 = vsel %vm188_vm0, %v184_v4, 0.0  ;;  %v211_v13 = vrot.slane %v210_v9, 4  ;;  %v205_v16 = vadd.f32 %v204_v12, %v203_v8  ;;  %s794_s12 = scalar_lea.hbm %s843_s2, %s425_s27  ;;  %s308_s13 = scalar_lea.sflag [#allocation4], %s766_s29 }
  0x35   : > { %v197_v11 = vrot.slane %v196_v7, 4  ;;  %v191_v14 = vadd.f32 %v190_v10, %v189_v6  ;;  %s547_s5 = scalar_lea.vmem %s325_s3, 256  ;;  %s648_s8 = smov [#allocation5]  }
  0x36   : > { %v212_v17 = vadd.f32 %v211_v13, %v210_v9  ;;  %v206_v20 = vrot.slane %v205_v16, 2  ;;  %p548_p8 = scmp.ne.s32.totalorder %s325_s3, %s547_s5  ;;  %s551_s6 = sshll.u32 %s648_s8, 4  ;;  %s552_s6 = int_to_ptr.vmem [resolvable:$false] %s551_s6 }
  0x37   : > { %v198_v15 = vadd.f32 %v197_v11, %v196_v7  ;;  %v192_v18 = vrot.slane %v191_v14, 2  ;;  %s553_s17 = scalar_lea.vmem %s552_s6, 512  ;;  %p554_p1 = scmp.lt.s32.totalorder %s325_s3, %s552_s6 }
  0x38   : > { %v213_v21 = vrot.slane %v212_v17, 2  ;;  %v207_v24 = vadd.f32 %v206_v20, %v205_v16  ;;  %p549_p12 = pnand %p548_p8, %p729_p9  ;;  %p555_p2 = scmp.lt.s32.totalorder %s553_s17, %s547_s5 }
  0x39   : > { %v199_v19 = vrot.slane %v198_v15, 2  ;;  %v193_v22 = vadd.f32 %v192_v18, %v191_v14 }
  0x3a   : > { %v214_v25 = vadd.f32 %v213_v21, %v212_v17  ;;  %v208_v28 = vrot.slane %v207_v24, 1  ;;  %v298_v21 = vlaneseq  ;;  %p550_p0 = pneg %p549_p12  ;;  %p556_p4 = por %p555_p2, %p554_p1 }
  0x3b   : > { %v200_v23 = vadd.f32 %v199_v19, %v198_v15  ;;  %v194_v26 = vrot.slane %v193_v22, 1  ;;  %v647_v19 = vmov 839922192  }
  0x3c   : > { %v215_v29 = vrot.slane %v214_v25, 1  ;;  %v209_v32 = vadd.f32 %v208_v28, %v207_v24  ;;  %v296_v20 = vunpack.c.l.s4 %v647_v19  ;;  %p557_p5 = pnand %p556_p4, %p550_p0 }
  0x3d   : > { %v201_v27 = vrot.slane %v200_v23, 1  ;;  %v195_v30 = vadd.f32 %v194_v26, %v193_v22  ;;  %v299_v26 = vshrl.u32 %v298_v21, 7 }
  0x3e   : > { %v216_v33 = vadd.f32 %v215_v29, %v214_v25  ;;  %v220_v36 = vmul.f32 0.25, %v209_v32  ;;  %v297_v25 = vunpack.c.0.s8 %v296_v20 }
  0x3f   : > { %v202_v31 = vadd.f32 %v201_v27, %v200_v23  ;;  %v218_v34 = vmul.f32 0.25, %v195_v30 }
  0x40   : > { %v221_v37 = vmul.f32 0.25, %v216_v33  ;;  %v300_v29 = vsub.s32 %v297_v25, %v299_v26 }
  0x41   : > { %v219_v35 = vmul.f32 0.25, %v202_v31 }
  0x42   : > { %v227_v39 = vcombine.low %v220_v36, %v221_v37 }
  0x43   : > { %v226_v38 = vcombine.low %v218_v34, %v219_v35 }
  0x44   : > { %v231_v41 = vsub.f32 %v181_v3, %v227_v39 }
  0x45   : > { %v230_v40 = vsub.f32 %v180_v2, %v226_v38 }
  0x46   : > { %v233_v43 = vmul.f32 %v231_v41, %v231_v41 }
  0x47   : > { %v232_v42 = vmul.f32 %v230_v40, %v230_v40 }
  0x48   : > { %v237_v45 = vcombine.high %v233_v43, %v233_v43  ;;  %v254_v47 = vsel %vm188_vm0, %v233_v43, 0.0 }
  0x49   : > { %v236_v44 = vcombine.high %v232_v42, %v232_v42  ;;  %v240_v46 = vsel %vm188_vm0, %v232_v42, 0.0  ;;  %v255_v51 = vrot.slane %v254_v47, 4 }
  0x4a   : > { %v241_v49 = vrot.slane %v240_v46, 4  ;;  %v261_v50 = vsel %vm188_vm0, %v237_v45, 0.0 }
  0x4b   : > { %v247_v48 = vsel %vm188_vm0, %v236_v44, 0.0  ;;  %v262_v53 = vrot.slane %v261_v50, 4  ;;  %v256_v55 = vadd.f32 %v255_v51, %v254_v47 }
  0x4c   : > { %v248_v52 = vrot.slane %v247_v48, 4  ;;  %v242_v54 = vadd.f32 %v241_v49, %v240_v46 }
  0x4d   : > { %v263_v57 = vadd.f32 %v262_v53, %v261_v50  ;;  %v257_v59 = vrot.slane %v256_v55, 2 }
  0x4e   : > { %v249_v56 = vadd.f32 %v248_v52, %v247_v48  ;;  %v243_v58 = vrot.slane %v242_v54, 2 }
  0x4f   : > { %v264_v61 = vrot.slane %v263_v57, 2  ;;  %v258_v63 = vadd.f32 %v257_v59, %v256_v55 }
  0x50   : > { %v250_v60 = vrot.slane %v249_v56, 2  ;;  %v244_v62 = vadd.f32 %v243_v58, %v242_v54 }
  0x51   : > { %v265_v1 = vadd.f32 %v264_v61, %v263_v57  ;;  %v259_v3 = vrot.slane %v258_v63, 1 }
  0x52   : > { %v251_v0 = vadd.f32 %v250_v60, %v249_v56  ;;  %v245_v2 = vrot.slane %v244_v62, 1 }
  0x53   : > { %v266_v5 = vrot.slane %v265_v1, 1  ;;  %v260_v7 = vadd.f32 %v259_v3, %v258_v63 }
  0x54   : > { %v252_v4 = vrot.slane %v251_v0, 1  ;;  %v246_v6 = vadd.f32 %v245_v2, %v244_v62 }
  0x55   : > { %v267_v9 = vadd.f32 %v266_v5, %v265_v1  ;;  %v270_v11 = vmul.f32 0.25, %v260_v7 }
  0x56   : > { %v253_v8 = vadd.f32 %v252_v4, %v251_v0  ;;  %v268_v10 = vmul.f32 0.25, %v246_v6 }
  0x57   : > { %v271_v13 = vmul.f32 0.25, %v267_v9  ;;  %v274_v15 = vadd.f32 1e-05, %v270_v11 }
  0x58   : > { %v269_v12 = vmul.f32 0.25, %v253_v8  ;;  %v272_v14 = vadd.f32 1e-05, %v268_v10 }
  0x59   : > { %v275_v17 = vadd.f32 1e-05, %v271_v13 }
  0x5a   : > { %v273_v16 = vadd.f32 1e-05, %v269_v12  ;;  %511 = vrsqrt.f32 %v272_v14 }
  0x5b   : > { %513 = vrsqrt.f32 %v274_v15 }
  0x5c   : > { %515 = vrsqrt.f32 %v273_v16 }
  0x5d   : > { %517 = vrsqrt.f32 %v275_v17 }
  0x67   : > { %v512_v18 = vpop.eup %511 }
  0x68   : > { %v514_v22 = vpop.eup %513 }
  0x69   : > { %v516_v23 = vpop.eup %515 }
  0x6a   : > { %v518_v24 = vpop.eup %517  ;;  %v284_v27 = vcombine.low %v512_v18, %v516_v23 }
  0x6b   : > { %v285_v28 = vcombine.low %v514_v22, %v518_v24 }
  0x6c   : > { %v288_v30 = vmul.f32 %v284_v27, %v230_v40 }
  0x6d   : > { %v289_v31 = vmul.f32 %v285_v28, %v231_v41 }
  0xad   : > { %v294_v32 = vpop.permute.xlu0 %293 }
  0xae   : > { %v301_v33 = vrot.slane %v294_v32, %v300_v29 }
  0xb0   : > { %v303_v34 = vmul.f32 %v301_v33, %v288_v30  ;;  %v304_v35 = vmul.f32 %v301_v33, %v289_v31 }
  0xb2   : > { %305 = vst [vmem:[%s177_s21] sm:$0xff] %v303_v34  ;;  %306 = vst [vmem:[%s177_s21 + $0x8] sm:$0xff] %v304_v35 }
  0xb3   : > { %560 = shalt.err (!%p557_p5)
}
  0xb4   : > { %s561_s7 = scalar_lea.hbm %s794_s12, 256  ;;  %s565_s24 = scalar_lea.hbm %s843_s2, 2048 }
  0xb5   : > { %p562_p6 = scmp.ne.s32.totalorder %s794_s12, %s561_s7  ;;  %p566_p10 = scmp.lt.s32.totalorder %s794_s12, %s843_s2 }
  0xb6   : > { %p567_p11 = scmp.lt.s32.totalorder %s565_s24, %s561_s7 }
  0xb7   : > { %p563_p7 = pnand %p562_p6, %p729_p9 }
  0xb8   : > { %p568_p13 = por %p567_p11, %p566_p10 }
  0xb9   : > { %p564_p3 = pneg %p563_p7 }
  0xbb   : > { %p569_p8 = pnand %p568_p13, %p564_p3 }
  0xbd   : > { %572 = shalt.err (!%p569_p8)
}
  0xbe   : > { %430 = dma.vmem_to_hbm [thread:$0]  (%p729_p9), %s325_s3, 256, %s794_s12, %s308_s13  }
  0xbf PF: > { %p441_p12 = scmp.ge.s32.totalorder %s643_s16, 2  ;;  %s336_s27 = sand.u32 1, %s615_s9  }
  0xc0   : > { %p849_p0 = scmp.ne.s32.totalorder %s847_s28, 0  ;;  %s337_s21 = scalar_lea.sflag [#allocation4], %s336_s27 }
  0xc2   : > { %p437_p1 = pnand %p441_p12, %p849_p0 }
  0xc4   : > { %p438_p2 = pneg %p437_p1 }
  0xc6   : > { %610 = dma.done.wait (%p438_p2), %s337_s21, 256  }
  0xc7   : > { %612 = vsyncadd (%p438_p2), %s337_s21, 4294967040  ;;  %s18_s16 = sadd.s32 1, %s643_s16   ;;  %s850_s9 = smov %s619_s10 }
  0xc8   : > { %p15_p4 = scmp.ge.s32.totalorder %s18_s16, 10   ;;  %s851_s10 = smov %s623_s11 }
  0xc9   : > { %s852_s11 = smov %s742_s30  ;;  %s853_s12 = smov %s635_s14 }
  0xca   : > { %s854_s13 = smov %s639_s15  ;;  %s855_s14 = smov %s858_s19 }
  0xcb   : > { %s856_s15 = smov %s862_s20  ;;  %17 = sbr.rel (!%p15_p4) target bundleno = 7 (0x7), region = 73 }
  0xd0   :  { %342 = vsyncpa [#allocation3], 1 }
  0xd1   :  { %344 = vsyncpa [#allocation3 + $0x1], 1 }
  0xd2   :  { %345 = vsyncpa [#allocation4], 1 }
  0xd3   :  { %347 = vsyncpa [#allocation4 + $0x1], 1 }

</bundles_post_ra>
